<compile_context>
chip_gen: v7x
topology: tpu7x:2x2x1
jax: 0.10.0
libtpu: 0.0.40
codegen_flags: <defaults>
</compile_context>

<pallas_src>
import functools

import jax
import jax.numpy as jnp
from jax.experimental import pallas as pl
from jax.experimental.pallas import tpu as pltpu

LANE = 128
NEG_BIAS = -1e30  # padded-lane bias: exp() underflows to exactly 0


def gating_kernel(x_ref, w_ref, b_ref, o_ref, *, num_experts):
    # MXU matmul over the lane-padded expert width; always accumulate in f32.
    logits = jnp.dot(x_ref[...], w_ref[...], preferred_element_type=jnp.float32)
    logits = logits + b_ref[...].astype(jnp.float32)      # (TB, E_pad) + (1, E_pad)
    # Padded lanes carry bias -1e30: they never win the max and exp() == 0, so the
    # denominator sums only the real experts.
    m = jnp.max(logits, axis=-1, keepdims=True)
    e = jnp.exp(logits - m)
    denom = jnp.sum(e, axis=-1, keepdims=True)
    probs = e / denom                                      # exact divide: rows sum to 1
    # Write only the real expert columns (masked store, tiny traffic) -> no separate
    # post-kernel slice pass.
    # NOTE: on a ragged last batch tile the garbage rows may produce NaN here; Pallas
    # masks the out-of-bounds row writes, so HBM outputs stay correct. Don't "fix" it.
    o_ref[...] = probs[:, :num_experts].astype(o_ref.dtype)


def prepare_gating_params(weight, bias, param_dtype=None):
    """One-time parameter prep (do NOT call per forward).

    weight: [num_experts, input_size] (PyTorch nn.Linear layout); bias: [num_experts].
    param_dtype: e.g. jnp.bfloat16 to halve HBM traffic on v6e/v7x (accumulation and
    softmax stay f32 inside the kernel).  Bias is kept f32 (tiny, added post-matmul).
    Returns (w_t_pad [input_size, E_pad], b_pad [1, E_pad] f32, num_experts)."""
    num_experts, input_size = weight.shape
    e_pad = max(LANE, ((num_experts + LANE - 1) // LANE) * LANE)
    w_dtype = param_dtype if param_dtype is not None else weight.dtype
    w_t_pad = (jnp.zeros((input_size, e_pad), dtype=w_dtype)
               .at[:, :num_experts].set(weight.T.astype(w_dtype)))
    b_pad = (jnp.full((1, e_pad), NEG_BIAS, dtype=jnp.float32)
             .at[0, :num_experts].set(bias.astype(jnp.float32)))
    return w_t_pad, b_pad, num_experts


def _vmem_budget():
    """(vmem_limit_bytes, tile_budget_bytes) derived from the chip's VMEM capacity.
    Fallback assumes 64 MiB physical (v7x per-TC), which is safe on every generation."""
    try:
        cap = int(pltpu.get_tpu_info().vmem_capacity_bytes)
    except Exception:  # not on TPU / API unavailable at build time
        cap = 64 * 1024 * 1024
    vmem_limit = min((cap * 7) // 8, 112 * 1024 * 1024)   # leave physical headroom
    tile_budget = vmem_limit - 8 * 1024 * 1024            # headroom for compiler scratch
    return vmem_limit, max(tile_budget, 8 * 1024 * 1024)


def _choose_tb(batch, input_size, e_pad, x_itemsize, w_itemsize,
               out_cols, out_itemsize, budget):
    """Batch tile: as large as the VMEM budget allows (target the 512-1024-row
    roofline plateau), after reserving the resident weight/bias (counted double-
    buffered to be safe), while keeping >= 2 grid steps when B > 8 so both v7x
    TensorCores participate."""
    if batch <= 8:
        return batch  # block == full dim is always layout-legal
    resident = 2 * input_size * e_pad * w_itemsize + 2 * e_pad * 4
    avail = max(budget - resident, 2 * 1024 * 1024)
    # per-row: double-buffered x + double-buffered out + f32 softmax intermediates
    per_row = 2 * input_size * x_itemsize + 2 * out_cols * out_itemsize + 3 * e_pad * 4
    tb = int(avail // max(per_row, 1))
    tb = max(8, min(tb, 1024))
    # ensure >= 2 grid steps (tb <= ceil(B/2), rounded up to a sublane multiple)
    half = ((-(-batch // 2)) + 7) // 8 * 8
    tb = min(tb, half)
    return max(8, (tb // 8) * 8)


def gating_forward(x, w_t_pad, b_pad, num_experts):
    """x: [B, input_size]; prepared params from prepare_gating_params().
    Returns softmax(x @ W.T + b, axis=-1) of shape [B, num_experts]."""
    B, input_size = x.shape
    e_pad = w_t_pad.shape[1]
    out_dtype = x.dtype

    # bf16 HBM-side streaming when the prepared weights are bf16 (v6e/v7x win);
    # matmul accumulation + softmax stay f32 inside the kernel (v5e-safe).
    if w_t_pad.dtype == jnp.bfloat16 and x.dtype != jnp.bfloat16:
        x = x.astype(jnp.bfloat16)

    vmem_limit, tile_budget = _vmem_budget()
    tb = _choose_tb(B, input_size, e_pad,
                    x_itemsize=jnp.dtype(x.dtype).itemsize,
                    w_itemsize=jnp.dtype(w_t_pad.dtype).itemsize,
                    out_cols=num_experts,
                    out_itemsize=jnp.dtype(out_dtype).itemsize,
                    budget=tile_budget)

    x_bytes = B * input_size * jnp.dtype(x.dtype).itemsize
    w_bytes = input_size * e_pad * jnp.dtype(w_t_pad.dtype).itemsize
    o_bytes = B * num_experts * jnp.dtype(out_dtype).itemsize
    cost = pl.CostEstimate(
        flops=2 * B * input_size * e_pad + 6 * B * e_pad,
        transcendentals=B * e_pad,
        bytes_accessed=x_bytes + w_bytes + e_pad * 4 + o_bytes,
    )

    kernel = functools.partial(gating_kernel, num_experts=num_experts)
    return pl.pallas_call(
        kernel,
        out_shape=jax.ShapeDtypeStruct((B, num_experts), out_dtype),
        grid_spec=pltpu.PrefetchScalarGridSpec(
            num_scalar_prefetch=0,
            grid=(pl.cdiv(B, tb),),
            in_specs=[
                pl.BlockSpec((tb, input_size), lambda i: (i, 0)),     # streamed x tile
                pl.BlockSpec((input_size, e_pad), lambda i: (0, 0)),  # weight, resident
                pl.BlockSpec((1, e_pad), lambda i: (0, 0)),           # bias, resident
            ],
            out_specs=pl.BlockSpec((tb, num_experts), lambda i: (i, 0)),
        ),
        compiler_params=pltpu.CompilerParams(
            dimension_semantics=("parallel",),   # rows independent -> megacore-shardable
            vmem_limit_bytes=vmem_limit,
        ),
        cost_estimate=cost,
    )(x, w_t_pad, b_pad)


def gating_network(x, weight, bias, param_dtype=None):
    """Convenience wrapper matching the PyTorch module signature (prep per call;
    prefer prepare_gating_params() once + gating_forward() in real use)."""
    w_t_pad, b_pad, num_experts = prepare_gating_params(weight, bias, param_dtype)
    return gating_forward(x, w_t_pad, b_pad, num_experts)


if __name__ == "__main__":
    # Small shapes consistent with the module's forward: x [B, input_size].
    B, input_size, num_experts = 8, 32, 8

    key = jax.random.PRNGKey(0)
    kx, kw = jax.random.split(key)

    x = jax.random.normal(kx, (B, input_size), dtype=jnp.float32)

    # Deterministic init matching _initialize_weights(): weight ~ N(0, 0.001), bias = 0.
    weight = 0.001 * jax.random.normal(kw, (num_experts, input_size), dtype=jnp.float32)
    bias = jnp.zeros((num_experts,), dtype=jnp.float32)

    # One-time param prep (f32 here to match the PyTorch module), then the hot forward.
    w_t_pad, b_pad, E = prepare_gating_params(weight, bias)
    out = gating_forward(x, w_t_pad, b_pad, E)
    out = jax.block_until_ready(out)

    # Sanity check against pure-JAX reference (exact divide in-kernel -> tight match).
    ref = jax.nn.softmax(x @ weight.T + bias, axis=-1)
    assert out.shape == (B, num_experts)
    assert jnp.allclose(out, ref, atol=2e-3, rtol=2e-3)
    assert jnp.allclose(jnp.sum(out, axis=-1), jnp.ones((B,)), atol=1e-3)

    print("KERNEL_OK")
</pallas_src>

<mosaic_0001>
module attributes {stable_mosaic.version = 11 : i64} {
  func.func @gating_kernel(%arg0: i32, %arg1: memref<8x32xf32, #tpu.memory_space<vmem>>, %arg2: memref<32x128xf32, #tpu.memory_space<vmem>>, %arg3: memref<1x128xf32, #tpu.memory_space<vmem>>, %arg4: memref<8x8xf32, #tpu.memory_space<vmem>>) attributes {dimension_semantics = [#tpu.dimension_semantics<parallel>], iteration_bounds = array<i64: 1>, scalar_prefetch = 0 : i64, scratch_operands = 0 : i64, tpu.core_type = #tpu.core_type<tc>, window_params = [{transform_indices = @transform_0, window_bounds = array<i64: 8, 32>}, {pipeline_mode = #tpu.pipeline_mode<synchronous>, transform_indices = @transform_1, window_bounds = array<i64: 32, 128>}, {pipeline_mode = #tpu.pipeline_mode<synchronous>, transform_indices = @transform_2, window_bounds = array<i64: 1, 128>}, {transform_indices = @transform_3, window_bounds = array<i64: 8, 8>}]} {
    %c0 = arith.constant 0 : index
    %c0_0 = arith.constant 0 : index
    %0 = vector.load %arg1[%c0, %c0_0] : memref<8x32xf32, #tpu.memory_space<vmem>>, vector<8x32xf32>
    %c0_1 = arith.constant 0 : index
    %c0_2 = arith.constant 0 : index
    %1 = vector.load %arg2[%c0_1, %c0_2] : memref<32x128xf32, #tpu.memory_space<vmem>>, vector<32x128xf32>
    %cst = arith.constant dense<0.000000e+00> : vector<8x128xf32>
    %2 = tpu.matmul %0, %1, %cst {dimension_numbers = #tpu.dot_dimension_numbers<[1], [0], [0], [1], [0, 0, 1, 1], [], []>} : vector<8x32xf32>, vector<32x128xf32>, vector<8x128xf32> -> vector<8x128xf32>
    %c0_3 = arith.constant 0 : index
    %c0_4 = arith.constant 0 : index
    %3 = vector.load %arg3[%c0_3, %c0_4] : memref<1x128xf32, #tpu.memory_space<vmem>>, vector<1x128xf32>
    %4 = vector.broadcast %3 : vector<1x128xf32> to vector<8x128xf32>
    %5 = arith.addf %2, %4 : vector<8x128xf32>
    %cst_5 = arith.constant dense<0xFF800000> : vector<8xf32>
    %6 = vector.multi_reduction <maximumf>, %5, %cst_5 [1] : vector<8x128xf32> to vector<8xf32>
    %7 = vector.shape_cast %6 : vector<8xf32> to vector<8x1xf32>
    %8 = vector.broadcast %7 : vector<8x1xf32> to vector<8x128xf32>
    %9 = arith.subf %5, %8 : vector<8x128xf32>
    %10 = math.exp %9 : vector<8x128xf32>
    %cst_6 = arith.constant dense<0.000000e+00> : vector<8xf32>
    %11 = vector.multi_reduction <add>, %10, %cst_6 [1] : vector<8x128xf32> to vector<8xf32>
    %12 = vector.shape_cast %11 : vector<8xf32> to vector<8x1xf32>
    %13 = vector.broadcast %12 : vector<8x1xf32> to vector<8x128xf32>
    %14 = arith.divf %10, %13 : vector<8x128xf32>
    %15 = vector.extract_strided_slice %14 {offsets = [0, 0], sizes = [8, 8], strides = [1, 1]} : vector<8x128xf32> to vector<8x8xf32>
    %c0_7 = arith.constant 0 : index
    %c0_8 = arith.constant 0 : index
    %16 = vector.load %arg4[%c0_7, %c0_8] : memref<8x8xf32, #tpu.memory_space<vmem>>, vector<8x8xf32>
    tpu.vector_store %arg4[%c0_7, %c0_8], %15 {strides = array<i32>} : memref<8x8xf32, #tpu.memory_space<vmem>>, vector<8x8xf32>,
    return
  }
  func.func @transform_0(%arg0: i32) -> (i32, i32) {
    %c0_i32 = arith.constant 0 : i32
    %c0_i32_0 = arith.constant 0 : i32
    return %arg0, %c0_i32 : i32, i32
  }
  func.func @transform_1(%arg0: i32) -> (i32, i32) {
    %c0_i32 = arith.constant 0 : i32
    %c0_i32_0 = arith.constant 0 : i32
    %c0_i32_1 = arith.constant 0 : i32
    return %c0_i32, %c0_i32_0 : i32, i32
  }
  func.func @transform_2(%arg0: i32) -> (i32, i32) {
    %c0_i32 = arith.constant 0 : i32
    %c0_i32_0 = arith.constant 0 : i32
    %c0_i32_1 = arith.constant 0 : i32
    return %c0_i32, %c0_i32_0 : i32, i32
  }
  func.func @transform_3(%arg0: i32) -> (i32, i32) {
    %c0_i32 = arith.constant 0 : i32
    %c0_i32_0 = arith.constant 0 : i32
    return %arg0, %c0_i32 : i32, i32
  }
}

</mosaic_0001>

<bundles_post_ra>
// kernel: tpu_custom_call.1
= control target key start
LH: loop header
LB: loop body
LE: loop exit
PB: predicated region body
PF: predicated region fallthrough
CT: control target
= control target key end

     0   :  { %8 = vsyncpa [#allocation3], 0  ;;  %s336_s0 = inlined_call_operand.hbm [shape: f32[8,32], index: 0, kind: input, shape index: {}]   ;;  %s337_s1 = inlined_call_operand.hbm [shape: f32[32,128], index: 1, kind: input, shape index: {}]   ;;  %s338_s2 = inlined_call_operand.vmem [shape: f32[1,128], index: 2, kind: input, shape index: {}]   ;;  %s339_s3 = inlined_call_operand.hbm [shape: f32[8,8], index: 3, kind: output, shape index: {}]  }
   0x1   :  { %9 = vsyncpa [#allocation6], 0 }
   0x2   :  { %10 = vsyncpa [#allocation4], 0  ;;  %s262_s12 = smov [#allocation2]   ;;  %s263_s14 = smov [#allocation5]  }
   0x3   :  { %s17_s13 = sshll.u32 %s262_s12, 4  ;;  %s26_s15 = sshll.u32 %s263_s14, 4  ;;  %s18_s13 = int_to_ptr.vmem [resolvable:$true] %s17_s13  ;;  %s290_s15 = int_to_ptr.vmem [resolvable:$true] %s26_s15 }
   0x4   :  { %s190_s18 = scalar_lea.hbm %s336_s0, 128 }
   0x5   :  { %p191_p0 = scmp.ne.s32.totalorder %s336_s0, %s190_s18  ;;  %p194_p1 = scmp.lt.u32.totalorder %s190_s18, %s336_s0 }
   0x7   :  { %p196_p2 = pnand %p194_p1, %p191_p0 }
   0x9   :  { %199 = shalt.err (!%p196_p2)
}
   0xa   :  { %s200_s23 = scalar_lea.vmem %s18_s13, 128  ;;  %p205_p4 = scmp.lt.s32.totalorder %s18_s13, %s18_s13 }
   0xb   :  { %p201_p3 = scmp.ne.s32.totalorder %s18_s13, %s200_s23  ;;  %p206_p5 = scmp.lt.s32.totalorder %s200_s23, %s200_s23 }
   0xd   :  { %p207_p6 = por %p206_p5, %p205_p4 }
   0xf   :  { %p208_p7 = pnand %p207_p6, %p201_p3 }
  0x11   :  { %211 = shalt.err (!%p208_p7)
}
  0x12   :  { %20 = dma.hbm_to_vmem [thread:$0]  %s336_s0, 128, %s18_s13, [#allocation3]  }
  0x13   :  { %s212_s28 = scalar_lea.hbm %s337_s1, 512 }
  0x14   :  { %p213_p8 = scmp.ne.s32.totalorder %s337_s1, %s212_s28  ;;  %p216_p9 = scmp.lt.u32.totalorder %s212_s28, %s337_s1 }
  0x16   :  { %p218_p10 = pnand %p216_p9, %p213_p8 }
  0x18   :  { %221 = shalt.err (!%p218_p10)
}
  0x19   :  { %s222_s6 = scalar_lea.vmem %s290_s15, 512  ;;  %p227_p12 = scmp.lt.s32.totalorder %s290_s15, %s290_s15 }
  0x1a   :  { %p223_p11 = scmp.ne.s32.totalorder %s290_s15, %s222_s6  ;;  %p228_p13 = scmp.lt.s32.totalorder %s222_s6, %s222_s6 }
  0x1c   :  { %p229_p0 = por %p228_p13, %p227_p12 }
  0x1e   :  { %p230_p1 = pnand %p229_p0, %p223_p11 }
  0x20   :  { %233 = shalt.err (!%p230_p1)
}
  0x21   :  { %s264_s0 = smov 128   ;;  %s265_s7 = smov 8  }
  0x22   :  { %32 = dma.hbm_to_vmem [thread:$0]  %s337_s1, 512, %s290_s15, [#allocation6], %s264_s0, %s264_s0, %s265_s7  }
  0x23   :  { %256 = dma.done.wait [#allocation3], 128  }
  0x24   :  { %257 = vsyncadd [#allocation3], 4294967168 }
  0x25   :  { %258 = dma.done.wait [#allocation6], 512  }
  0x26   :  { %259 = vsyncadd [#allocation6], 4294966784  ;;  %v266_v0 = vmov 0.0|0.0   ;;  %vm267_vm0 = vmmov 0   ;;  %v268_v1 = vmov 0.0   ;;  %v42_v2 = vld [vmem:[#allocation5] sm:$0xff] }
  0x27   :  { %172 = vmatprep.subr.bf16.mxu0 %v266_v0  ;;  %169 = vmatprep.mubr.msk.f32.mxu0 %vm267_vm0, %v268_v1  ;;  %v43_v3 = vld [vmem:[#allocation5 + $0x8] sm:$0xff]  ;;  %v44_v4 = vld [vmem:[#allocation5 + $0x10] sm:$0xff]  ;;  %v45_v6 = vld [vmem:[#allocation5 + $0x18] sm:$0xff]  ;;  %vm53_vm1 = vcmask 261120   ;;  %s269_s11 = smov [#allocation7]   ;;  %vm136_vm2 = vcmask 64512  }
  0x28   :  { %v173_v5 = vpack.c.bf16 %v43_v3, %v42_v2  ;;  %v176_v7 = vpack.c.bf16 %v45_v6, %v44_v4  ;;  %v41_v8 = vld [vmem:[#allocation2] sm:$0xff]  ;;  %s144_s12 = sshll.u32 %s269_s11, 4  ;;  %s145_s12 = int_to_ptr.vmem [resolvable:$true] %s144_s12 }
  0x29   :  { %v154_v9 = vld [vmem:[%s338_s2] ss:$0 sm:$0xff]  ;;  %s234_s2 = scalar_lea.vmem %s145_s12, 128  ;;  %p239_p3 = scmp.lt.s32.totalorder %s145_s12, %s145_s12 }
  0x2a   :  { %174 = vmatpush3.bf16.msra.mxu0 %v173_v5  ;;  %p235_p2 = scmp.ne.s32.totalorder %s145_s12, %s234_s2  ;;  %p240_p4 = scmp.lt.s32.totalorder %s234_s2, %s234_s2 }
  0x2b   :  { %175 = vmatprep.subr.bf16.mxu0 %v266_v0 }
  0x2c   :  { %p241_p5 = por %p240_p4, %p239_p3 }
  0x2e   :  { %177 = vmatpush3.bf16.msra.mxu0 %v176_v7  ;;  %p242_p6 = pnand %p241_p5, %p235_p2 }
  0x31   :  { %170 = vmatmul.mubr.msk.f32.vlgmr.msra.gmra.mrb[0].mxu0 %vm53_vm1, %v41_v8 }
 0x104   :  { %v123_v10 = vpop.f32.mrb[0].mxu0 }
 0x105   :  { %v124_v11 = vadd.f32 %v154_v9, %v123_v10  ;;  %v171_v12 = vpop.f32.mrb[1].mxu0 }
 0x107   :  { %127 = vmax.xlane.f32.xlu0 %v124_v11 }
 0x194   :  { %v128_v13 = vpop.xlane.xlu0 %127 }
 0x195   :  { %v129_v14 = vsub.f32 %v124_v11, %v128_v13 }
 0x197   :  { %v130_v15 = vmul.f32 1.442695, %v129_v14 }
 0x199   :  { %186 = vpow2.f32 %v130_v15 }
 0x1a3   :  { %v187_v16 = vpop.eup %186 }
 0x1a4   :  { %132 = vadd.xlane.f32.xlu0 %v187_v16 }
 0x231   :  { %v133_v17 = vpop.xlane.xlu0 %132 }
 0x232   :  { %188 = vrcp.f32 %v133_v17 }
 0x23c   :  { %v189_v18 = vpop.eup %188 }
 0x23d   :  { %v135_v19 = vmul.f32 %v189_v18, %v187_v16 }
 0x23f   :  { %137 = vst.msk [vmem:[#allocation7] sm:$0xff] %vm136_vm2, %v135_v19 }
 0x240   :  { %245 = shalt.err (!%p242_p6)
}
 0x241   :  { %s246_s15 = scalar_lea.hbm %s339_s3, 128 }
 0x242   :  { %p247_p7 = scmp.ne.s32.totalorder %s339_s3, %s246_s15  ;;  %p250_p8 = scmp.lt.u32.totalorder %s246_s15, %s339_s3 }
 0x244   :  { %p252_p9 = pnand %p250_p8, %p247_p7 }
 0x246   :  { %255 = shalt.err (!%p252_p9)
}
 0x247   :  { %147 = dma.vmem_to_hbm [thread:$0]  %s145_s12, 128, %s339_s3, [#allocation4]  }
 0x248   :  { %260 = dma.done.wait [#allocation4], 128  }
 0x249   :  { %261 = vsyncadd [#allocation4], 4294967168 }
 0x24a   :  { %151 = vsyncpa [#allocation3], 1 }
 0x24b   :  { %152 = vsyncpa [#allocation6], 1 }
 0x24c   :  { %153 = vsyncpa [#allocation4], 1 }

</bundles_post_ra>
